<compile_context>
chip_gen: v5e
topology: v5e:2x2
jax: 0.10.0
libtpu: 0.0.40
codegen_flags: <defaults>
</compile_context>

<pallas_src>
import inspect

import jax
import jax.numpy as jnp
from jax.experimental import pallas as pl
from jax.experimental.pallas import tpu as pltpu


def _round_up(x, m):
    return ((x + m - 1) // m) * m


try:
    _SUPPORTS_PIPELINE_MODE = (
        "pipeline_mode" in inspect.signature(pl.BlockSpec).parameters)
except (TypeError, ValueError):  # pragma: no cover
    _SUPPORTS_PIPELINE_MODE = False


def _buffered(n):
    """BlockSpec kwargs selecting per-operand buffer depth.

    Buffered(1): resident operand (constant block index) -> no dead second
    VMEM copy. Buffered(3): deeper pipelining for streamed weight tiles.
    """
    return {"pipeline_mode": pl.Buffered(n)} if _SUPPORTS_PIPELINE_MODE else {}


def _vmem_budget_bytes():
    # Usable VMEM per TensorCore with headroom left for Mosaic internal
    # scratch: ~52 MiB of v7x's 64 MiB, ~104 MiB of v5e/v6e's 128 MiB.
    try:
        cap = int(pltpu.get_tpu_info().vmem_capacity_bytes)
    except Exception:  # conservative (v7x-sized) default if the query fails
        cap = 64 << 20
    return (cap * 13) // 16


# ---------------------------------------------------------------------------
# Kernels
# ---------------------------------------------------------------------------

def _mlp_kernel_resident(x_ref, w1_ref, b1_ref, w2_ref, b2_ref, o_ref):
    """Whole hidden dim resident: 1-D grid over batch tiles, no accumulator."""
    h = jnp.dot(x_ref[...], w1_ref[...], preferred_element_type=jnp.float32)
    h = jnp.maximum(h + b1_ref[...], 0.0)
    # dropout == identity in eval mode (see TODO at top).
    o_ref[...] = (jnp.dot(h.astype(w2_ref.dtype), w2_ref[...],
                          preferred_element_type=jnp.float32)
                  + b2_ref[...]).astype(o_ref.dtype)


def _mlp_kernel_streaming(x_ref, w1_ref, b1_ref, w2_ref, b2_ref, o_ref, acc_ref):
    """grid = (i: batch tile [parallel], j: hidden tile [reduction, innermost])."""
    j = pl.program_id(1)

    @pl.when(j == 0)
    def _():
        acc_ref[...] = jnp.zeros_like(acc_ref)

    # linear1 tile + ReLU. Padded hidden columns have zero weight and zero
    # bias -> ReLU output 0 -> they contribute nothing to linear2, so hidden
    # tiling + padding is exact.
    h = jnp.dot(x_ref[...], w1_ref[...],
                preferred_element_type=jnp.float32) + b1_ref[...]
    h = jnp.maximum(h, 0.0)

    # dropout == identity in eval mode.

    acc_ref[...] += jnp.dot(h.astype(w2_ref.dtype), w2_ref[...],
                            preferred_element_type=jnp.float32)

    @pl.when(j == pl.num_programs(1) - 1)
    def _():
        # bias2 added once per batch tile in the finalize branch.
        o_ref[...] = (acc_ref[...] + b2_ref[...]).astype(o_ref.dtype)


# ---------------------------------------------------------------------------
# Wrapper
# ---------------------------------------------------------------------------

def pad_params(w1, b1, w2, b2):
    """Pad weights to lane-dense (128-aligned) shapes ONCE, at init time.

    Hoisting this out of the forward path avoids copying the full weight
    matrices through HBM on every call; padding is skipped when dims are
    already aligned. Returns a dict consumed by mlp_forward.
    """
    n_in, n_hidden = w1.shape
    n_out = w2.shape[1]
    n_in_p = _round_up(n_in, 128)
    n_hid_p = _round_up(n_hidden, 128)
    n_out_p = _round_up(n_out, 128)

    def pad2(a, r, c):
        if a.shape == (r, c):
            return a
        return jnp.pad(a, ((0, r - a.shape[0]), (0, c - a.shape[1])))

    return dict(
        w1=pad2(w1, n_in_p, n_hid_p),
        b1=pad2(b1.reshape(1, -1), 1, n_hid_p),
        w2=pad2(w2, n_hid_p, n_out_p),
        b2=pad2(b2.reshape(1, -1), 1, n_out_p),
        n_in=n_in, n_hidden=n_hidden, n_out=n_out,
    )


def mlp_forward(x, params, *, batch_tile=256, hidden_tile=512,
                force_streaming=False):
    B, n_in = x.shape
    assert n_in == params["n_in"]
    w1, b1, w2, b2 = params["w1"], params["b1"], params["w2"], params["b2"]
    n_in_p, n_hid_p = w1.shape
    n_out_p = w2.shape[1]
    n_out = params["n_out"]
    dtype = x.dtype
    itemsize = jnp.dtype(dtype).itemsize

    # Batch tile: >= 2 tiles whenever B > 8 so both v7x TensorCores get work
    # on the 'parallel' batch axis; minimum sublane tile is 8.
    if B >= 2 * batch_tile:
        tb = batch_tile
    elif B > 8:
        tb = _round_up((B + 1) // 2, 8)
    else:
        tb = _round_up(max(B, 1), 8)
    b_p = _round_up(B, tb)
    num_batch_tiles = b_p // tb

    # Only x is padded per call (weights were pre-padded in pad_params).
    if (b_p, n_in_p) != x.shape:
        x = jnp.pad(x, ((0, b_p - B), (0, n_in_p - n_in)))

    vmem_budget = _vmem_budget_bytes()
    headroom = 4 << 20  # Mosaic internal scratch / spills

    w_bytes = (n_in_p * n_hid_p + n_hid_p * n_out_p) * itemsize
    bias_bytes = (n_hid_p + n_out_p) * itemsize
    io_bytes = 2 * (tb * n_in_p + tb * n_out_p) * itemsize  # double-buffered x/out
    h_bytes = tb * n_hid_p * 4                              # f32 intermediate

    # If Buffered(1) isn't available, resident weights get double-buffered.
    w_buf = 1 if _SUPPORTS_PIPELINE_MODE else 2
    resident_bytes = w_buf * (w_bytes + bias_bytes) + io_bytes + h_bytes + headroom
    use_resident = (not force_streaming) and (resident_bytes <= vmem_budget)

    flops = 2 * b_p * n_in_p * n_hid_p + 2 * b_p * n_hid_p * n_out_p

    if use_resident:
        grid = (num_batch_tiles,)
        in_specs = [
            pl.BlockSpec((tb, n_in_p), lambda i: (i, 0)),                     # x tile
            pl.BlockSpec((n_in_p, n_hid_p), lambda i: (0, 0), **_buffered(1)),  # w1 resident
            pl.BlockSpec((1, n_hid_p), lambda i: (0, 0), **_buffered(1)),       # b1 resident
            pl.BlockSpec((n_hid_p, n_out_p), lambda i: (0, 0), **_buffered(1)),  # w2 resident
            pl.BlockSpec((1, n_out_p), lambda i: (0, 0), **_buffered(1)),        # b2 resident
        ]
        out_specs = pl.BlockSpec((tb, n_out_p), lambda i: (i, 0))
        scratch_shapes = ()
        kernel = _mlp_kernel_resident
        dim_sem = ("parallel",)
        vmem_limit = int(min(max(resident_bytes, 16 << 20), vmem_budget))
        # Weights read exactly once from HBM.
        bytes_accessed = itemsize * (b_p * n_in_p + b_p * n_out_p) + w_bytes + bias_bytes
    else:
        # Streaming fallback: pick the largest hidden tile that divides the
        # padded hidden dim, is <= hidden_tile, and fits the VMEM budget.
        def _stream_vmem(t):
            return (2 * tb * n_in_p * itemsize                       # x tiles
                    + 3 * (n_in_p * t + t * n_out_p) * itemsize      # w1/w2 Buffered(3)
                    + 2 * t * itemsize + n_out_p * itemsize          # b1 (dbl) + b2
                    + 2 * tb * n_out_p * itemsize                    # out tiles
                    + tb * t * 4 + tb * n_out_p * 4                  # h + acc (f32)
                    + headroom)

        n_blk = n_hid_p // 128
        divisor_tiles = [m * 128 for m in range(1, n_blk + 1) if n_blk % m == 0]
        fitting = [t for t in divisor_tiles
                   if t <= max(hidden_tile, 128) and _stream_vmem(t) <= vmem_budget]
        th = max(fitting) if fitting else 128

        grid = (num_batch_tiles, n_hid_p // th)
        in_specs = [
            pl.BlockSpec((tb, n_in_p), lambda i, j: (i, 0)),                   # x tile
            pl.BlockSpec((n_in_p, th), lambda i, j: (0, j), **_buffered(3)),   # w1 streamed
            pl.BlockSpec((1, th), lambda i, j: (0, j)),                        # b1 tile
            pl.BlockSpec((th, n_out_p), lambda i, j: (j, 0), **_buffered(3)),  # w2 streamed
            pl.BlockSpec((1, n_out_p), lambda i, j: (0, 0), **_buffered(1)),   # b2 resident
        ]
        out_specs = pl.BlockSpec((tb, n_out_p), lambda i, j: (i, 0))
        scratch_shapes = (pltpu.VMEM((tb, n_out_p), jnp.float32),)
        kernel = _mlp_kernel_streaming
        dim_sem = ("parallel", "arbitrary")
        vmem_limit = int(min(max(_stream_vmem(th), 16 << 20), vmem_budget))
        # Weights are re-streamed once per batch tile in this regime.
        bytes_accessed = (itemsize * (b_p * n_in_p + b_p * n_out_p)
                          + (w_bytes + bias_bytes) * num_batch_tiles)

    cost = pl.CostEstimate(flops=flops, transcendentals=0,
                           bytes_accessed=int(bytes_accessed))

    out_padded = pl.pallas_call(
        kernel,
        out_shape=jax.ShapeDtypeStruct((b_p, n_out_p), dtype),
        grid_spec=pltpu.PrefetchScalarGridSpec(
            num_scalar_prefetch=0,
            grid=grid,
            in_specs=in_specs,
            out_specs=out_specs,
            scratch_shapes=scratch_shapes,
        ),
        compiler_params=pltpu.CompilerParams(
            dimension_semantics=dim_sem,
            vmem_limit_bytes=vmem_limit,
        ),
        cost_estimate=cost,
    )(x, w1, b1, w2, b2)

    return out_padded[:B, :n_out]


def init_params(key, n_in, n_hidden, n_out, dtype=jnp.float32):
    # Deterministic init mimicking nn.Linear's uniform(-1/sqrt(fan_in), 1/sqrt(fan_in)).
    # Weights stored as (in_features, out_features): kernel computes x @ W + b,
    # matching PyTorch's y = x @ W.T + b with W of shape (out, in).
    k1, k2, k3, k4 = jax.random.split(key, 4)
    bound1 = 1.0 / (n_in ** 0.5)
    bound2 = 1.0 / (n_hidden ** 0.5)
    w1 = jax.random.uniform(k1, (n_in, n_hidden), dtype, -bound1, bound1)
    b1 = jax.random.uniform(k2, (n_hidden,), dtype, -bound1, bound1)
    w2 = jax.random.uniform(k3, (n_hidden, n_out), dtype, -bound2, bound2)
    b2 = jax.random.uniform(k4, (n_out,), dtype, -bound2, bound2)
    return w1, b1, w2, b2


if __name__ == "__main__":
    key = jax.random.PRNGKey(0)
    kx, kp, kx2, kp2 = jax.random.split(key, 4)

    # Test 1: small MLP -> resident-weight fast path (1-D grid, no accumulator).
    B, n_in, n_hidden, n_out = 8, 16, 32, 4
    x = jax.random.normal(kx, (B, n_in), dtype=jnp.float32)
    w1, b1, w2, b2 = init_params(kp, n_in, n_hidden, n_out)
    params = pad_params(w1, b1, w2, b2)
    out = jax.block_until_ready(mlp_forward(x, params))
    ref = jnp.maximum(x @ w1 + b1, 0.0) @ w2 + b2
    assert out.shape == (B, n_out)
    assert jnp.allclose(out, ref, atol=1e-5, rtol=1e-5)

    # Test 2: exercise the streaming fallback (2-D grid, tiled reduction,
    # f32 accumulator) with 2 batch tiles and 2 hidden tiles.
    B2, n_in2, n_hidden2, n_out2 = 16, 16, 256, 4
    x2 = jax.random.normal(kx2, (B2, n_in2), dtype=jnp.float32)
    w1b, b1b, w2b, b2b = init_params(kp2, n_in2, n_hidden2, n_out2)
    params2 = pad_params(w1b, b1b, w2b, b2b)
    out2 = jax.block_until_ready(
        mlp_forward(x2, params2, hidden_tile=128, force_streaming=True))
    ref2 = jnp.maximum(x2 @ w1b + b1b, 0.0) @ w2b + b2b
    assert out2.shape == (B2, n_out2)
    assert jnp.allclose(out2, ref2, atol=1e-4, rtol=1e-4)

    print("KERNEL_OK")
</pallas_src>

<mosaic_0001>
module attributes {stable_mosaic.version = 11 : i64} {
  func.func @_mlp_kernel_resident(%arg0: i32, %arg1: memref<8x128xf32, #tpu.memory_space<vmem>>, %arg2: memref<128x128xf32, #tpu.memory_space<vmem>>, %arg3: memref<1x128xf32, #tpu.memory_space<vmem>>, %arg4: memref<128x128xf32, #tpu.memory_space<vmem>>, %arg5: memref<1x128xf32, #tpu.memory_space<vmem>>, %arg6: memref<8x128xf32, #tpu.memory_space<vmem>>) attributes {dimension_semantics = [#tpu.dimension_semantics<parallel>], iteration_bounds = array<i64: 1>, scalar_prefetch = 0 : i64, scratch_operands = 0 : i64, tpu.core_type = #tpu.core_type<tc>, window_params = [{transform_indices = @transform_0, window_bounds = array<i64: 8, 128>}, {pipeline_mode = #tpu.pipeline_mode<synchronous>, transform_indices = @transform_1, window_bounds = array<i64: 128, 128>}, {pipeline_mode = #tpu.pipeline_mode<synchronous>, transform_indices = @transform_2, window_bounds = array<i64: 1, 128>}, {pipeline_mode = #tpu.pipeline_mode<synchronous>, transform_indices = @transform_3, window_bounds = array<i64: 128, 128>}, {pipeline_mode = #tpu.pipeline_mode<synchronous>, transform_indices = @transform_4, window_bounds = array<i64: 1, 128>}, {transform_indices = @transform_5, window_bounds = array<i64: 8, 128>}]} {
    %c0 = arith.constant 0 : index
    %c0_0 = arith.constant 0 : index
    %0 = vector.load %arg1[%c0, %c0_0] : memref<8x128xf32, #tpu.memory_space<vmem>>, vector<8x128xf32>
    %c0_1 = arith.constant 0 : index
    %c0_2 = arith.constant 0 : index
    %1 = vector.load %arg2[%c0_1, %c0_2] : memref<128x128xf32, #tpu.memory_space<vmem>>, vector<128x128xf32>
    %cst = arith.constant dense<0.000000e+00> : vector<8x128xf32>
    %2 = tpu.matmul %0, %1, %cst {dimension_numbers = #tpu.dot_dimension_numbers<[1], [0], [0], [1], [0, 0, 1, 1], [], []>} : vector<8x128xf32>, vector<128x128xf32>, vector<8x128xf32> -> vector<8x128xf32>
    %c0_3 = arith.constant 0 : index
    %c0_4 = arith.constant 0 : index
    %3 = vector.load %arg3[%c0_3, %c0_4] : memref<1x128xf32, #tpu.memory_space<vmem>>, vector<1x128xf32>
    %4 = vector.broadcast %3 : vector<1x128xf32> to vector<8x128xf32>
    %5 = arith.addf %2, %4 : vector<8x128xf32>
    %cst_5 = arith.constant 0.000000e+00 : f32
    %6 = vector.broadcast %cst_5 : f32 to vector<8x128xf32>
    %7 = arith.maximumf %5, %6 : vector<8x128xf32>
    %c0_6 = arith.constant 0 : index
    %c0_7 = arith.constant 0 : index
    %8 = vector.load %arg4[%c0_6, %c0_7] : memref<128x128xf32, #tpu.memory_space<vmem>>, vector<128x128xf32>
    %cst_8 = arith.constant dense<0.000000e+00> : vector<8x128xf32>
    %9 = tpu.matmul %7, %8, %cst_8 {dimension_numbers = #tpu.dot_dimension_numbers<[1], [0], [0], [1], [0, 0, 1, 1], [], []>} : vector<8x128xf32>, vector<128x128xf32>, vector<8x128xf32> -> vector<8x128xf32>
    %c0_9 = arith.constant 0 : index
    %c0_10 = arith.constant 0 : index
    %10 = vector.load %arg5[%c0_9, %c0_10] : memref<1x128xf32, #tpu.memory_space<vmem>>, vector<1x128xf32>
    %11 = vector.broadcast %10 : vector<1x128xf32> to vector<8x128xf32>
    %12 = arith.addf %9, %11 : vector<8x128xf32>
    %c0_11 = arith.constant 0 : index
    %c0_12 = arith.constant 0 : index
    %13 = vector.load %arg6[%c0_11, %c0_12] : memref<8x128xf32, #tpu.memory_space<vmem>>, vector<8x128xf32>
    tpu.vector_store %arg6[%c0_11, %c0_12], %12 {strides = array<i32>} : memref<8x128xf32, #tpu.memory_space<vmem>>, vector<8x128xf32>,
    return
  }
  func.func @transform_0(%arg0: i32) -> (i32, i32) {
    %c0_i32 = arith.constant 0 : i32
    %c0_i32_0 = arith.constant 0 : i32
    return %arg0, %c0_i32 : i32, i32
  }
  func.func @transform_1(%arg0: i32) -> (i32, i32) {
    %c0_i32 = arith.constant 0 : i32
    %c0_i32_0 = arith.constant 0 : i32
    %c0_i32_1 = arith.constant 0 : i32
    return %c0_i32, %c0_i32_0 : i32, i32
  }
  func.func @transform_2(%arg0: i32) -> (i32, i32) {
    %c0_i32 = arith.constant 0 : i32
    %c0_i32_0 = arith.constant 0 : i32
    %c0_i32_1 = arith.constant 0 : i32
    return %c0_i32, %c0_i32_0 : i32, i32
  }
  func.func @transform_3(%arg0: i32) -> (i32, i32) {
    %c0_i32 = arith.constant 0 : i32
    %c0_i32_0 = arith.constant 0 : i32
    %c0_i32_1 = arith.constant 0 : i32
    return %c0_i32, %c0_i32_0 : i32, i32
  }
  func.func @transform_4(%arg0: i32) -> (i32, i32) {
    %c0_i32 = arith.constant 0 : i32
    %c0_i32_0 = arith.constant 0 : i32
    %c0_i32_1 = arith.constant 0 : i32
    return %c0_i32, %c0_i32_0 : i32, i32
  }
  func.func @transform_5(%arg0: i32) -> (i32, i32) {
    %c0_i32 = arith.constant 0 : i32
    %c0_i32_0 = arith.constant 0 : i32
    return %arg0, %c0_i32 : i32, i32
  }
}

</mosaic_0001>

<bundles_post_ra>
// kernel: tpu_custom_call.1
= control target key start
LH: loop header
LB: loop body
LE: loop exit
PB: predicated region body
PF: predicated region fallthrough
CT: control target
= control target key end

     0   :  { %10 = vsyncpa [#allocation3], 0  ;;  %s331_s0 = inlined_call_operand.hbm [shape: f32[8,128], index: 0, kind: input, shape index: {}]   ;;  %s332_s1 = inlined_call_operand.hbm [shape: f32[128,128], index: 1, kind: input, shape index: {}]   ;;  %s333_s2 = inlined_call_operand.vmem [shape: f32[1,128], index: 2, kind: input, shape index: {}]   ;;  %s334_s3 = inlined_call_operand.hbm [shape: f32[128,128], index: 3, kind: input, shape index: {}]   ;;  %s335_s4 = inlined_call_operand.vmem [shape: f32[1,128], index: 4, kind: input, shape index: {}]   ;;  %s336_s5 = inlined_call_operand.hbm [shape: f32[8,128], index: 5, kind: output, shape index: {}]  }
   0x1   :  { %11 = vsyncpa [#allocation6], 0  ;;  %s28_s20 = sshll.u32 %s332_s1, 4  ;;  %s29_s20 = int_to_ptr.hbm [resolvable:$true] %s28_s20 }
   0x2   :  { %12 = vsyncpa [#allocation4], 0  ;;  %s277_s21 = smov [#allocation5]   ;;  %s18_s25 = sshll.u32 %s331_s0, 4  ;;  %s19_s25 = int_to_ptr.hbm [resolvable:$true] %s18_s25 }
   0x3   :  { %s30_s22 = sshll.u32 %s277_s21, 4  ;;  %s278_s26 = smov 128   ;;  %s31_s22 = int_to_ptr.vmem [resolvable:$true] %s30_s22 }
   0x4   :  { %s279_s27 = smov 8   ;;  %s280_s28 = smov [#allocation2]  }
   0x5   :  { %36 = dma.hbm_to_vmem [thread:$0]  %s29_s20, 2048, %s31_s22, [#allocation6], %s278_s26, %s278_s26, %s279_s27  }
   0x6   :  { %s20_s29 = sshll.u32 %s280_s28, 4  ;;  %s43_s7 = sshll.u32 %s334_s3, 4  ;;  %s21_s29 = int_to_ptr.vmem [resolvable:$true] %s20_s29  ;;  %s44_s7 = int_to_ptr.hbm [resolvable:$true] %s43_s7 }
   0x7   :  { %23 = dma.hbm_to_vmem [thread:$0]  %s19_s25, 128, %s21_s29, [#allocation3]  }
   0x8   :  { %s281_s1 = smov [#allocation7]  }
   0x9   :  { %s45_s8 = sshll.u32 %s281_s1, 4  ;;  %s46_s8 = int_to_ptr.vmem [resolvable:$true] %s45_s8 }
   0xa   :  { %51 = dma.hbm_to_vmem [thread:$0]  %s44_s7, 2048, %s46_s8, [#allocation6], %s278_s26, %s278_s26, %s279_s27  }
   0xb   :  { %271 = dma.done.wait [#allocation3], 128  }
   0xc   :  { %272 = vsyncadd [#allocation3], 4294967168 }
   0xd   :  { %273 = dma.done.wait [#allocation6], 4096  }
   0xe   :  { %274 = vsyncadd [#allocation6], 4294963200  ;;  %v82_v0 = vld [vmem:[#allocation5 + $0x78] sm:$0xff]  ;;  %v81_v1 = vld [vmem:[#allocation5 + $0x70] sm:$0xff]  ;;  %s282_s11 = smov [#allocation8]   ;;  %s156_s15 = sshll.u32 %s336_s5, 4  ;;  %s157_s15 = int_to_ptr.hbm [resolvable:$true] %s156_s15 }
   0xf   :  { %87 = vmatpush.msra.mxu0 %v82_v0  ;;  %v80_v2 = vld [vmem:[#allocation5 + $0x68] sm:$0xff]  ;;  %v79_v3 = vld [vmem:[#allocation5 + $0x60] sm:$0xff]  ;;  %v123_v4 = vld [vmem:[#allocation7 + $0x78] sm:$0xff]  ;;  %s154_s12 = sshll.u32 %s282_s11, 4  ;;  %s155_s12 = int_to_ptr.vmem [resolvable:$true] %s154_s12 }
  0x10   :  { %v78_v5 = vld [vmem:[#allocation5 + $0x58] sm:$0xff]  ;;  %128 = vmatpush.msra.mxu1 %v123_v4  ;;  %v122_v6 = vld [vmem:[#allocation7 + $0x70] sm:$0xff]  ;;  %v121_v7 = vld [vmem:[#allocation7 + $0x68] sm:$0xff] }
  0x11   :  { %88 = vmatpush.msra.mxu0 %v81_v1  ;;  %v77_v8 = vld [vmem:[#allocation5 + $0x50] sm:$0xff]  ;;  %v120_v9 = vld [vmem:[#allocation7 + $0x60] sm:$0xff]  ;;  %v76_v10 = vld [vmem:[#allocation5 + $0x48] sm:$0xff] }
  0x12   :  { %129 = vmatpush.msra.mxu1 %v122_v6  ;;  %v119_v11 = vld [vmem:[#allocation7 + $0x58] sm:$0xff]  ;;  %v75_v12 = vld [vmem:[#allocation5 + $0x40] sm:$0xff]  ;;  %v118_v13 = vld [vmem:[#allocation7 + $0x50] sm:$0xff] }
  0x13   :  { %89 = vmatpush.msra.mxu0 %v80_v2  ;;  %v74_v14 = vld [vmem:[#allocation5 + $0x38] sm:$0xff]  ;;  %v117_v15 = vld [vmem:[#allocation7 + $0x48] sm:$0xff]  ;;  %v73_v16 = vld [vmem:[#allocation5 + $0x30] sm:$0xff] }
  0x14   :  { %130 = vmatpush.msra.mxu1 %v121_v7  ;;  %v116_v17 = vld [vmem:[#allocation7 + $0x40] sm:$0xff]  ;;  %v72_v18 = vld [vmem:[#allocation5 + $0x28] sm:$0xff]  ;;  %v115_v19 = vld [vmem:[#allocation7 + $0x38] sm:$0xff] }
  0x15   :  { %90 = vmatpush.msra.mxu0 %v79_v3  ;;  %v71_v20 = vld [vmem:[#allocation5 + $0x20] sm:$0xff]  ;;  %v114_v21 = vld [vmem:[#allocation7 + $0x30] sm:$0xff]  ;;  %v70_v22 = vld [vmem:[#allocation5 + $0x18] sm:$0xff] }
  0x16   :  { %131 = vmatpush.msra.mxu1 %v120_v9  ;;  %v113_v23 = vld [vmem:[#allocation7 + $0x28] sm:$0xff]  ;;  %v69_v24 = vld [vmem:[#allocation5 + $0x10] sm:$0xff]  ;;  %v112_v25 = vld [vmem:[#allocation7 + $0x20] sm:$0xff] }
  0x17   :  { %91 = vmatpush.msra.mxu0 %v78_v5  ;;  %v68_v26 = vld [vmem:[#allocation5 + $0x8] sm:$0xff]  ;;  %v111_v27 = vld [vmem:[#allocation7 + $0x18] sm:$0xff]  ;;  %v67_v28 = vld [vmem:[#allocation5] sm:$0xff] }
  0x18   :  { %132 = vmatpush.msra.mxu1 %v119_v11  ;;  %v66_v29 = vld [vmem:[#allocation2] sm:$0xff]  ;;  %v110_v30 = vld [vmem:[#allocation7 + $0x10] sm:$0xff]  ;;  %v109_v31 = vld [vmem:[#allocation7 + $0x8] sm:$0xff] }
  0x19   :  { %92 = vmatpush.msra.mxu0 %v77_v8  ;;  %v108_v32 = vld [vmem:[#allocation7] sm:$0xff]  ;;  %v173_v33 = vld [vmem:[%s333_s2] ss:$0 sm:$0xff] }
  0x1a   :  { %133 = vmatpush.msra.mxu1 %v118_v13  ;;  %v174_v37 = vld [vmem:[%s335_s4] ss:$0 sm:$0xff] }
  0x1b   :  { %93 = vmatpush.msra.mxu0 %v76_v10 }
  0x1c   :  { %134 = vmatpush.msra.mxu1 %v117_v15 }
  0x1d   :  { %94 = vmatpush.msra.mxu0 %v75_v12 }
  0x1e   :  { %135 = vmatpush.msra.mxu1 %v116_v17 }
  0x1f   :  { %95 = vmatpush.msra.mxu0 %v74_v14 }
  0x20   :  { %136 = vmatpush.msra.mxu1 %v115_v19 }
  0x21   :  { %96 = vmatpush.msra.mxu0 %v73_v16 }
  0x22   :  { %137 = vmatpush.msra.mxu1 %v114_v21 }
  0x23   :  { %97 = vmatpush.msra.mxu0 %v72_v18 }
  0x24   :  { %138 = vmatpush.msra.mxu1 %v113_v23 }
  0x25   :  { %98 = vmatpush.msra.mxu0 %v71_v20 }
  0x26   :  { %139 = vmatpush.msra.mxu1 %v112_v25 }
  0x27   :  { %99 = vmatpush.msra.mxu0 %v70_v22 }
  0x28   :  { %140 = vmatpush.msra.mxu1 %v111_v27 }
  0x29   :  { %100 = vmatpush.msra.mxu0 %v69_v24 }
  0x2a   :  { %141 = vmatpush.msra.mxu1 %v110_v30 }
  0x2b   :  { %101 = vmatpush.msra.mxu0 %v68_v26 }
  0x2c   :  { %142 = vmatpush.msra.mxu1 %v109_v31 }
  0x2d   :  { %102 = vmatpush.msra.mxu0 %v67_v28 }
  0x2e   :  { %103 = vmatmul.f32.vlgmr.msra.gmra.mxu0 %v66_v29  ;;  %143 = vmatpush.msra.mxu1 %v108_v32 }
  0xab   :  { %v104_v34 = vpop.f32.mrf.mxu0 }
  0xac   :  { %v105_v35 = vadd.f32 %v173_v33, %v104_v34 }
  0xae   :  { %v107_v36 = vmax.f32 %v105_v35, 0.0 }
  0xb0   :  { %144 = vmatmul.f32.vlgmr.msra.gmra.mxu1 %v107_v36 }
 0x12d   :  { %v145_v38 = vpop.f32.mrf.mxu1 }
 0x12e   :  { %v146_v39 = vadd.f32 %v174_v37, %v145_v38 }
 0x130   :  { %148 = vst [vmem:[#allocation8] sm:$0xff] %v146_v39 }
 0x131   :  { %159 = dma.vmem_to_hbm [thread:$0]  %s155_s12, 128, %s157_s15, [#allocation4]  }
 0x132   :  { %275 = dma.done.wait [#allocation4], 128  }
 0x133   :  { %276 = vsyncadd [#allocation4], 4294967168 }
 0x134   :  { %164 = vsyncpa [#allocation3], 1 }
 0x135   :  { %165 = vsyncpa [#allocation6], 1 }
 0x136   :  { %166 = vsyncpa [#allocation4], 1 }

</bundles_post_ra>
